<compile_context>
chip_gen: v7x
topology: tpu7x:2x2x1
jax: 0.10.0
libtpu: 0.0.40
codegen_flags: <defaults>
</compile_context>

<pallas_src>
import functools

import jax
import jax.numpy as jnp
from jax.experimental import pallas as pl
from jax.experimental.pallas import tpu as pltpu


def cross_attention_kernel(x_ref, wkv_ref, wq_ref, wo_ref, bo_ref,
                           hsum_ref, hexp_ref, o_ref, *, heads, dim_head):
    """One batch-block per grid step.

    x_ref    : (Bt, N, DIM)     tokens (compute dtype, bf16 by default)
    wkv_ref  : (DIM, 2*INNER)   [Wk^T | Wv^T]  (pre-transposed, fused)
    wq_ref   : (DIM, INNER)     Wq^T
    wo_ref   : (INNER, DIM)     Wout^T
    bo_ref   : (1, DIM)         output-projection bias (f32)
    hsum_ref : (INNER, H)       block-diag ones * softmax scale (per-head reduce)
    hexp_ref : (H, INNER)       block-diag ones (per-head lane expansion)
    o_ref    : (Bt, DIM)        output (the query is only the CLS token)
    """
    bt, n, dim = x_ref.shape
    inner = heads * dim_head

    x = x_ref[...]                                   # (Bt, N, DIM)
    x2d = x.reshape(bt * n, dim)                     # merge leading dims (free)

    # Fused K/V projection: one big MXU matmul, f32 accumulation.
    kv = jnp.dot(x2d, wkv_ref[...],
                 preferred_element_type=jnp.float32)          # (Bt*N, 2*INNER)

    # Lane-dense K/V split: plain lane slices, no per-head (h, dim_head)
    # reshape -> no VMEM relayout copies, vregs stay full.
    k = kv[:, :inner].reshape(bt, n, inner)                   # (Bt, N, INNER)
    v = kv[:, inner:].reshape(bt, n, inner)                   # (Bt, N, INNER)

    # Q projection: only the CLS row of each batch element -> M = Bt rows.
    q = jnp.dot(x[:, 0, :], wq_ref[...],
                preferred_element_type=jnp.float32)           # (Bt, INNER)

    # Scores: lane-dense q*k product; the per-head reduction over dim_head
    # lanes runs on the MXU (block-diagonal ones, scale folded in) instead of
    # a strided cross-lane XLU reduce.
    qk = k * q[:, None, :]                                    # (Bt, N, INNER)
    scores = jnp.dot(qk.reshape(bt * n, inner), hsum_ref[...],
                     preferred_element_type=jnp.float32)
    scores = scores.reshape(bt, n, heads)                     # (Bt, N, H)

    # Softmax over the key axis N (axis=1), f32 throughout.
    scores = scores - jnp.max(scores, axis=1, keepdims=True)
    e = jnp.exp(scores)                                       # (Bt, N, H)
    denom = jnp.sum(e, axis=1, keepdims=True)                 # (Bt, 1, H)
    attn = e * pl.reciprocal(denom, approx=True)              # EUP reciprocal

    # attn @ V with query length 1: expand each head weight across its
    # dim_head lanes on the MXU (keeps V lane-dense), then a weighted sum over
    # the key axis.  No head split and no (Bt, H, D) -> (Bt, INNER) relayout.
    attn_l = jnp.dot(attn.reshape(bt * n, heads), hexp_ref[...],
                     preferred_element_type=jnp.float32)
    out = jnp.sum(attn_l.reshape(bt, n, inner) * v, axis=1)   # (Bt, INNER) f32

    # Output projection in the params' dtype (keeps the fast bf16 MXU path),
    # f32 accumulation, + bias.  Dropout(p) is identity at inference.
    o = jnp.dot(out.astype(wo_ref.dtype), wo_ref[...],
                preferred_element_type=jnp.float32) + bo_ref[...]   # (Bt, DIM)
    o_ref[...] = o.astype(o_ref.dtype)


def _vmem_limit_bytes(bt, n, dim, inner, pbytes):
    """Scoped-VMEM budget: double-buffered x/out blocks, resident weights
    (default pipeline still allocates 2 buffers for grid-invariant operands),
    f32 intermediates (kv, qk, expanded attn), 2x headroom.  Clamped to
    [32 MiB, 64 MiB] so it is never below the per-generation defaults and
    never above v7x's physical VMEM."""
    x_blk = 2 * bt * n * dim * pbytes
    o_blk = 2 * bt * dim * 4
    weights = 2 * (dim * 2 * inner + dim * inner + inner * dim + dim) * pbytes
    inter = bt * n * (2 * inner + 2 * inner) * 4
    est = 2 * (x_blk + o_blk + weights + inter)
    return int(min(max(est, 32 << 20), 64 << 20))


def cross_attention(x, wk, wv, wq, wo, bo, *, heads, dim_head,
                    batch_block=32, param_dtype=jnp.bfloat16):
    """x: (B, N, DIM); wk/wv/wq: (INNER, DIM); wo: (DIM, INNER); bo: (DIM,).

    batch_block guidance: ~32-64 on v6e, ~16-32 on v7x (64 MiB VMEM),
    ~8-16 on v5e.  param_dtype=None keeps the caller's dtype end-to-end.
    """
    B, N, DIM = x.shape
    INNER = heads * dim_head
    scale = dim_head ** -0.5
    out_dtype = x.dtype                              # output keeps caller dtype

    # One-time layout plumbing (outside the kernel, free under XLA):
    # pre-transpose to (in, out) and fuse the K/V weights into one operand.
    wkv_t = jnp.concatenate([wk.T, wv.T], axis=1)    # (DIM, 2*INNER)
    wq_t = wq.T                                      # (DIM, INNER)
    wo_t = wo.T                                      # (INNER, DIM)
    bo2 = bo.reshape(1, DIM).astype(jnp.float32)     # bias stays f32

    if param_dtype is not None:                      # bf16 MXU inputs (default)
        x = x.astype(param_dtype)
        wkv_t = wkv_t.astype(param_dtype)
        wq_t = wq_t.astype(param_dtype)
        wo_t = wo_t.astype(param_dtype)
    pbytes = x.dtype.itemsize

    # Block-diagonal ones matrices driving the per-head MXU reduce / expand.
    head_of_lane = jnp.arange(INNER) // dim_head                       # (INNER,)
    eye_heads = (head_of_lane[:, None] ==
                 jnp.arange(heads)[None, :]).astype(jnp.float32)       # (INNER, H)
    hsum = eye_heads * jnp.float32(scale)                              # (INNER, H)
    hexp = eye_heads.T                                                 # (H, INNER)

    bt = min(batch_block, B)
    # v7x has 2 TensorCores: keep the parallel batch axis >= 2 grid steps
    # whenever the split stays sublane-aligned (multiple of 8 rows).
    half = pl.cdiv(B, 2)
    if pl.cdiv(B, bt) < 2 and half % 8 == 0:
        bt = half
    grid = (pl.cdiv(B, bt),)
    # Note: if B % bt != 0 the padded tail block computes over undefined rows;
    # those rows are confined to discarded output rows (no cross-batch
    # reduction), so results for valid rows are unaffected.

    flops = (2 * B * N * DIM * 2 * INNER            # fused KV projection
             + 2 * B * DIM * INNER                  # Q projection (CLS only)
             + 2 * B * INNER * DIM                  # output projection
             + 4 * B * N * INNER * heads)           # score reduce + attn expand
    bytes_accessed = (x.size * pbytes
                      + (wkv_t.size + wq_t.size + wo_t.size) * pbytes
                      + bo2.size * 4 + (hsum.size + hexp.size) * 4
                      + B * DIM * jnp.dtype(out_dtype).itemsize)
    cost = pl.CostEstimate(flops=int(flops),
                           transcendentals=int(B * N * heads),
                           bytes_accessed=int(bytes_accessed))

    kernel = functools.partial(cross_attention_kernel,
                               heads=heads, dim_head=dim_head)

    out2d = pl.pallas_call(
        kernel,
        out_shape=jax.ShapeDtypeStruct((B, DIM), out_dtype),
        grid_spec=pltpu.PrefetchScalarGridSpec(
            num_scalar_prefetch=0,
            grid=grid,
            in_specs=[
                pl.BlockSpec((bt, N, DIM), lambda b: (b, 0, 0)),     # x (per step)
                # Grid-invariant blocks (constant index_map): fetched once and
                # kept resident in VMEM across all batch steps.
                pl.BlockSpec((DIM, 2 * INNER), lambda b: (0, 0)),    # [Wk^T|Wv^T]
                pl.BlockSpec((DIM, INNER), lambda b: (0, 0)),        # Wq^T
                pl.BlockSpec((INNER, DIM), lambda b: (0, 0)),        # Wo^T
                pl.BlockSpec((1, DIM), lambda b: (0, 0)),            # b_out
                pl.BlockSpec((INNER, heads), lambda b: (0, 0)),      # head reduce
                pl.BlockSpec((heads, INNER), lambda b: (0, 0)),      # head expand
            ],
            out_specs=pl.BlockSpec((bt, DIM), lambda b: (b, 0)),
        ),
        compiler_params=pltpu.CompilerParams(
            dimension_semantics=("parallel",),       # batch axis -> megacore
            vmem_limit_bytes=_vmem_limit_bytes(bt, N, DIM, INNER, pbytes)),
        cost_estimate=cost,
    )(x, wkv_t, wq_t, wo_t, bo2, hsum, hexp)

    return out2d.reshape(B, 1, DIM)


def cross_attention_ref(x, wk, wv, wq, wo, bo, *, heads, dim_head):
    """Pure-JAX reference reproducing the PyTorch forward exactly."""
    B, N, DIM = x.shape
    scale = dim_head ** -0.5
    k = x @ wk.T                                   # (B, N, INNER)
    v = x @ wv.T
    q = x[:, 0:1, :] @ wq.T                        # (B, 1, INNER)

    def split(t):                                  # 'b n (h d) -> b h n d'
        return t.reshape(B, t.shape[1], heads, dim_head).transpose(0, 2, 1, 3)

    kh, vh, qh = split(k), split(v), split(q)
    dots = jnp.einsum('bhid,bhjd->bhij', qh, kh) * scale
    attn = jax.nn.softmax(dots, axis=-1)
    out = jnp.einsum('bhij,bhjd->bhid', attn, vh)          # (B, H, 1, D)
    out = out.transpose(0, 2, 1, 3).reshape(B, 1, heads * dim_head)
    return out @ wo.T + bo                                  # bo: (DIM,)


if __name__ == "__main__":
    # Small, deterministic setup (project_out=True branch of the module).
    B, N, DIM = 2, 8, 32
    HEADS, DIM_HEAD = 4, 16
    INNER = HEADS * DIM_HEAD

    key = jax.random.PRNGKey(0)
    kx, kk, kv_, kq, ko, kb = jax.random.split(key, 6)

    x = jax.random.normal(kx, (B, N, DIM), dtype=jnp.float32)

    # PyTorch-style Linear init: U(-1/sqrt(fan_in), 1/sqrt(fan_in)).
    def init_w(k, out_f, in_f):
        bound = 1.0 / (in_f ** 0.5)
        return jax.random.uniform(k, (out_f, in_f), jnp.float32, -bound, bound)

    wk = init_w(kk, INNER, DIM)
    wv = init_w(kv_, INNER, DIM)
    wq = init_w(kq, INNER, DIM)
    wo = init_w(ko, DIM, INNER)
    bo = jax.random.uniform(kb, (DIM,), jnp.float32,
                            -1.0 / (INNER ** 0.5), 1.0 / (INNER ** 0.5))

    ref = cross_attention_ref(x, wk, wv, wq, wo, bo,
                              heads=HEADS, dim_head=DIM_HEAD)

    # Default path: bf16 MXU inputs on all generations, f32 accumulation.
    out_default = cross_attention(x, wk, wv, wq, wo, bo,
                                  heads=HEADS, dim_head=DIM_HEAD)
    out_default = jax.block_until_ready(out_default)
    assert out_default.shape == (B, 1, DIM)
    err = jnp.max(jnp.abs(out_default.astype(jnp.float32) - ref))
    assert bool(jnp.isfinite(err)) and float(err) < 0.2, \
        "default (bf16-input) kernel grossly off vs reference"

    # Full-f32 path (tight correctness check; tolerance covers the EUP approx
    # reciprocal in the softmax normalization).
    out_f32 = cross_attention(x, wk, wv, wq, wo, bo,
                              heads=HEADS, dim_head=DIM_HEAD,
                              param_dtype=jnp.float32)
    out_f32 = jax.block_until_ready(out_f32)
    assert out_f32.shape == (B, 1, DIM)
    assert jnp.allclose(out_f32, ref, atol=5e-3, rtol=5e-3), \
        "f32 kernel mismatch vs reference"

    print("KERNEL_OK")
</pallas_src>

<mosaic_0001>
module attributes {stable_mosaic.version = 11 : i64} {
  func.func @cross_attention_kernel(%arg0: i32, %arg1: memref<2x8x32xbf16, #tpu.memory_space<vmem>>, %arg2: memref<32x128xbf16, #tpu.memory_space<vmem>>, %arg3: memref<32x64xbf16, #tpu.memory_space<vmem>>, %arg4: memref<64x32xbf16, #tpu.memory_space<vmem>>, %arg5: memref<1x32xf32, #tpu.memory_space<vmem>>, %arg6: memref<64x4xf32, #tpu.memory_space<vmem>>, %arg7: memref<4x64xf32, #tpu.memory_space<vmem>>, %arg8: memref<2x32xf32, #tpu.memory_space<vmem>>) attributes {dimension_semantics = [#tpu.dimension_semantics<parallel>], iteration_bounds = array<i64: 1>, scalar_prefetch = 0 : i64, scratch_operands = 0 : i64, tpu.core_type = #tpu.core_type<tc>, window_params = [{transform_indices = @transform_0, window_bounds = array<i64: 2, 8, 32>}, {pipeline_mode = #tpu.pipeline_mode<synchronous>, transform_indices = @transform_1, window_bounds = array<i64: 32, 128>}, {pipeline_mode = #tpu.pipeline_mode<synchronous>, transform_indices = @transform_2, window_bounds = array<i64: 32, 64>}, {pipeline_mode = #tpu.pipeline_mode<synchronous>, transform_indices = @transform_3, window_bounds = array<i64: 64, 32>}, {pipeline_mode = #tpu.pipeline_mode<synchronous>, transform_indices = @transform_4, window_bounds = array<i64: 1, 32>}, {pipeline_mode = #tpu.pipeline_mode<synchronous>, transform_indices = @transform_5, window_bounds = array<i64: 64, 4>}, {pipeline_mode = #tpu.pipeline_mode<synchronous>, transform_indices = @transform_6, window_bounds = array<i64: 4, 64>}, {transform_indices = @transform_7, window_bounds = array<i64: 2, 32>}]} {
    %c0 = arith.constant 0 : index
    %c0_0 = arith.constant 0 : index
    %c0_1 = arith.constant 0 : index
    %0 = vector.load %arg1[%c0, %c0_0, %c0_1] : memref<2x8x32xbf16, #tpu.memory_space<vmem>>, vector<2x8x32xbf16>
    %1 = vector.shape_cast %0 : vector<2x8x32xbf16> to vector<16x32xbf16>
    %c0_2 = arith.constant 0 : index
    %c0_3 = arith.constant 0 : index
    %2 = vector.load %arg2[%c0_2, %c0_3] : memref<32x128xbf16, #tpu.memory_space<vmem>>, vector<32x128xbf16>
    %cst = arith.constant dense<0.000000e+00> : vector<16x128xf32>
    %3 = tpu.matmul %1, %2, %cst {dimension_numbers = #tpu.dot_dimension_numbers<[1], [0], [0], [1], [0, 0, 1, 1], [], []>} : vector<16x32xbf16>, vector<32x128xbf16>, vector<16x128xf32> -> vector<16x128xf32>
    %4 = vector.extract_strided_slice %3 {offsets = [0, 0], sizes = [16, 64], strides = [1, 1]} : vector<16x128xf32> to vector<16x64xf32>
    %5 = vector.shape_cast %4 : vector<16x64xf32> to vector<2x8x64xf32>
    %6 = vector.extract_strided_slice %3 {offsets = [0, 64], sizes = [16, 64], strides = [1, 1]} : vector<16x128xf32> to vector<16x64xf32>
    %7 = vector.shape_cast %6 : vector<16x64xf32> to vector<2x8x64xf32>
    %8 = vector.extract_strided_slice %0 {offsets = [0, 0, 0], sizes = [2, 1, 32], strides = [1, 1, 1]} : vector<2x8x32xbf16> to vector<2x1x32xbf16>
    %9 = vector.shape_cast %8 : vector<2x1x32xbf16> to vector<2x32xbf16>
    %c0_4 = arith.constant 0 : index
    %c0_5 = arith.constant 0 : index
    %10 = vector.load %arg3[%c0_4, %c0_5] : memref<32x64xbf16, #tpu.memory_space<vmem>>, vector<32x64xbf16>
    %cst_6 = arith.constant dense<0.000000e+00> : vector<2x64xf32>
    %11 = tpu.matmul %9, %10, %cst_6 {dimension_numbers = #tpu.dot_dimension_numbers<[1], [0], [0], [1], [0, 0, 1, 1], [], []>} : vector<2x32xbf16>, vector<32x64xbf16>, vector<2x64xf32> -> vector<2x64xf32>
    %12 = vector.shape_cast %11 : vector<2x64xf32> to vector<2x1x64xf32>
    %13 = vector.broadcast %12 : vector<2x1x64xf32> to vector<2x8x64xf32>
    %14 = arith.mulf %5, %13 : vector<2x8x64xf32>
    %15 = vector.shape_cast %14 : vector<2x8x64xf32> to vector<16x64xf32>
    %c0_7 = arith.constant 0 : index
    %c0_8 = arith.constant 0 : index
    %16 = vector.load %arg6[%c0_7, %c0_8] : memref<64x4xf32, #tpu.memory_space<vmem>>, vector<64x4xf32>
    %cst_9 = arith.constant dense<0.000000e+00> : vector<16x4xf32>
    %17 = tpu.matmul %15, %16, %cst_9 {dimension_numbers = #tpu.dot_dimension_numbers<[1], [0], [0], [1], [0, 0, 1, 1], [], []>} : vector<16x64xf32>, vector<64x4xf32>, vector<16x4xf32> -> vector<16x4xf32>
    %18 = vector.shape_cast %17 : vector<16x4xf32> to vector<2x8x4xf32>
    %cst_10 = arith.constant dense<0xFF800000> : vector<2x4xf32>
    %19 = vector.multi_reduction <maximumf>, %18, %cst_10 [1] : vector<2x8x4xf32> to vector<2x4xf32>
    %20 = vector.shape_cast %19 : vector<2x4xf32> to vector<2x1x4xf32>
    %21 = vector.broadcast %20 : vector<2x1x4xf32> to vector<2x8x4xf32>
    %22 = arith.subf %18, %21 : vector<2x8x4xf32>
    %23 = math.exp %22 : vector<2x8x4xf32>
    %cst_11 = arith.constant dense<0.000000e+00> : vector<2x4xf32>
    %24 = vector.multi_reduction <add>, %23, %cst_11 [1] : vector<2x8x4xf32> to vector<2x4xf32>
    %25 = vector.shape_cast %24 : vector<2x4xf32> to vector<2x1x4xf32>
    %26 = tpu.reciprocal %25 {approx = true} : vector<2x1x4xf32> -> vector<2x1x4xf32>
    %27 = vector.broadcast %26 : vector<2x1x4xf32> to vector<2x8x4xf32>
    %28 = arith.mulf %23, %27 : vector<2x8x4xf32>
    %29 = vector.shape_cast %28 : vector<2x8x4xf32> to vector<16x4xf32>
    %c0_12 = arith.constant 0 : index
    %c0_13 = arith.constant 0 : index
    %30 = vector.load %arg7[%c0_12, %c0_13] : memref<4x64xf32, #tpu.memory_space<vmem>>, vector<4x64xf32>
    %cst_14 = arith.constant dense<0.000000e+00> : vector<16x64xf32>
    %31 = tpu.matmul %29, %30, %cst_14 {dimension_numbers = #tpu.dot_dimension_numbers<[1], [0], [0], [1], [0, 0, 1, 1], [], []>} : vector<16x4xf32>, vector<4x64xf32>, vector<16x64xf32> -> vector<16x64xf32>
    %32 = vector.shape_cast %31 : vector<16x64xf32> to vector<2x8x64xf32>
    %33 = arith.mulf %32, %7 : vector<2x8x64xf32>
    %cst_15 = arith.constant dense<0.000000e+00> : vector<2x64xf32>
    %34 = vector.multi_reduction <add>, %33, %cst_15 [1] : vector<2x8x64xf32> to vector<2x64xf32>
    %35 = arith.truncf %34 : vector<2x64xf32> to vector<2x64xbf16>
    %c0_16 = arith.constant 0 : index
    %c0_17 = arith.constant 0 : index
    %36 = vector.load %arg4[%c0_16, %c0_17] : memref<64x32xbf16, #tpu.memory_space<vmem>>, vector<64x32xbf16>
    %cst_18 = arith.constant dense<0.000000e+00> : vector<2x32xf32>
    %37 = tpu.matmul %35, %36, %cst_18 {dimension_numbers = #tpu.dot_dimension_numbers<[1], [0], [0], [1], [0, 0, 1, 1], [], []>} : vector<2x64xbf16>, vector<64x32xbf16>, vector<2x32xf32> -> vector<2x32xf32>
    %c0_19 = arith.constant 0 : index
    %c0_20 = arith.constant 0 : index
    %38 = vector.load %arg5[%c0_19, %c0_20] : memref<1x32xf32, #tpu.memory_space<vmem>>, vector<1x32xf32>
    %39 = vector.broadcast %38 : vector<1x32xf32> to vector<2x32xf32>
    %40 = arith.addf %37, %39 : vector<2x32xf32>
    %c0_21 = arith.constant 0 : index
    %c0_22 = arith.constant 0 : index
    %41 = vector.load %arg8[%c0_21, %c0_22] : memref<2x32xf32, #tpu.memory_space<vmem>>, vector<2x32xf32>
    tpu.vector_store %arg8[%c0_21, %c0_22], %40 {strides = array<i32>} : memref<2x32xf32, #tpu.memory_space<vmem>>, vector<2x32xf32>,
    return
  }
  func.func @transform_0(%arg0: i32) -> (i32, i32, i32) {
    %c0_i32 = arith.constant 0 : i32
    %c0_i32_0 = arith.constant 0 : i32
    %c0_i32_1 = arith.constant 0 : i32
    return %arg0, %c0_i32, %c0_i32_0 : i32, i32, i32
  }
  func.func @transform_1(%arg0: i32) -> (i32, i32) {
    %c0_i32 = arith.constant 0 : i32
    %c0_i32_0 = arith.constant 0 : i32
    %c0_i32_1 = arith.constant 0 : i32
    return %c0_i32, %c0_i32_0 : i32, i32
  }
  func.func @transform_2(%arg0: i32) -> (i32, i32) {
    %c0_i32 = arith.constant 0 : i32
    %c0_i32_0 = arith.constant 0 : i32
    %c0_i32_1 = arith.constant 0 : i32
    return %c0_i32, %c0_i32_0 : i32, i32
  }
  func.func @transform_3(%arg0: i32) -> (i32, i32) {
    %c0_i32 = arith.constant 0 : i32
    %c0_i32_0 = arith.constant 0 : i32
    %c0_i32_1 = arith.constant 0 : i32
    return %c0_i32, %c0_i32_0 : i32, i32
  }
  func.func @transform_4(%arg0: i32) -> (i32, i32) {
    %c0_i32 = arith.constant 0 : i32
    %c0_i32_0 = arith.constant 0 : i32
    %c0_i32_1 = arith.constant 0 : i32
    return %c0_i32, %c0_i32_0 : i32, i32
  }
  func.func @transform_5(%arg0: i32) -> (i32, i32) {
    %c0_i32 = arith.constant 0 : i32
    %c0_i32_0 = arith.constant 0 : i32
    %c0_i32_1 = arith.constant 0 : i32
    return %c0_i32, %c0_i32_0 : i32, i32
  }
  func.func @transform_6(%arg0: i32) -> (i32, i32) {
    %c0_i32 = arith.constant 0 : i32
    %c0_i32_0 = arith.constant 0 : i32
    %c0_i32_1 = arith.constant 0 : i32
    return %c0_i32, %c0_i32_0 : i32, i32
  }
  func.func @transform_7(%arg0: i32) -> (i32, i32) {
    %c0_i32 = arith.constant 0 : i32
    %c0_i32_0 = arith.constant 0 : i32
    return %arg0, %c0_i32 : i32, i32
  }
}

</mosaic_0001>

<bundles_post_ra>
// kernel: tpu_custom_call.1
= control target key start
LH: loop header
LB: loop body
LE: loop exit
PB: predicated region body
PF: predicated region fallthrough
CT: control target
= control target key end

     0   :  { %v703_v1 = vmov 0.0   ;;  %vm704_vm0 = vmmov 0   ;;  %vm105_vm1 = vcmask 1041409   ;;  %s847_s0 = inlined_call_operand.vmem [shape: bf16[2,8,32], index: 0, kind: input, shape index: {}]   ;;  %s848_s1 = inlined_call_operand.vmem [shape: bf16[32,128], index: 1, kind: input, shape index: {}]   ;;  %s849_s2 = inlined_call_operand.vmem [shape: bf16[32,64], index: 2, kind: input, shape index: {}]   ;;  %s850_s3 = inlined_call_operand.vmem [shape: bf16[64,32], index: 3, kind: input, shape index: {}]   ;;  %s851_s4 = inlined_call_operand.vmem [shape: f32[1,32], index: 4, kind: input, shape index: {}]   ;;  %s852_s5 = inlined_call_operand.vmem [shape: f32[64,4], index: 5, kind: input, shape index: {}]   ;;  %s853_s6 = inlined_call_operand.vmem [shape: f32[4,64], index: 6, kind: input, shape index: {}]   ;;  %s854_s7 = inlined_call_operand.hbm [shape: f32[2,32], index: 7, kind: output, shape index: {}]  }
   0x1   :  { %v660_v0 = vld [vmem:[%s849_s2] sm:$0xff]   ;;  %595 = vmatprep.subr.bf16.mxu1 %v703_v1  ;;  %587 = vmatprep.subr.bf16.mxu0 %v703_v1  ;;  %v662_v3 = vld [vmem:[%s849_s2 + $0x8] sm:$0xff]   ;;  %v200_v11 = vld [vmem:[%s852_s5 + $0x10] sm:$0xff] }
   0x2   :  { %v661_v2 = vld [vmem:[%s848_s1] sm:$0xff]   ;;  %596 = vmatpush3.bf16.msra.mxu1 %v660_v0  ;;  %599 = vmatprep.mubr.msk.bf16.mxu1 %vm704_vm0, %v703_v1  ;;  %v663_v4 = vld [vmem:[%s848_s1 + $0x8] sm:$0xff]   ;;  %v201_v12 = vld [vmem:[%s852_s5 + $0x18] sm:$0xff] }
   0x3   :  { %588 = vmatpush3.bf16.msra.mxu0 %v661_v2  ;;  %597 = vmatprep.subr.bf16.mxu1 %v703_v1  ;;  %v28_v5 = vld [vmem:[%s847_s0] sm:$0xf]  ;;  %v29_v6 = vld [vmem:[%s847_s0 + $0x4] sm:$0xf]  ;;  %v199_v10 = vld [vmem:[%s852_s5 + $0x8] sm:$0xff]  ;;  %v643_v17 = vpack.c.bf16 %v201_v12, %v200_v11 }
   0x4   :  { %589 = vmatprep.subr.bf16.mxu0 %v703_v1  ;;  %591 = vmatprep.mubr.msk.bf16.mxu0 %vm704_vm0, %v703_v1  ;;  %v198_v7 = vld [vmem:[%s852_s5] sm:$0xff]  ;;  %v547_v8 = vcombine.low %v28_v5, %v28_v5  ;;  %v548_v9 = vcombine.low %v29_v6, %v29_v6  ;;  %v543_v13 = vcombine.low %v28_v5, %v29_v6 }
   0x5   :  { %v639_v14 = vpack.c.bf16 %v199_v10, %v198_v7 }
   0x6   :  { %598 = vmatpush3.bf16.msra.mxu1 %v662_v3  ;;  %v102_v15 = vunpack.c.l.b16 %v547_v8  ;;  %v103_v16 = vunpack.c.l.b16 %v548_v9 }
   0x7   :  { %590 = vmatpush3.bf16.msra.mxu0 %v663_v4  ;;  %627 = vmatprep.subr.bf16.mxu1 %v703_v1 }
   0x8   :  { %640 = vmatprep.subr.bf16.mxu0 %v639_v14 }
   0x9   :  { %12 = vsyncpa [#allocation3], 0  ;;  %vm51_vm2 = vcmask 261120   ;;  %v104_v18 = vrot.slane %v103_v16, 7  ;;  %v202_v21 = vld [vmem:[%s852_s5 + $0x20] sm:$0xff]  ;;  %v203_v22 = vld [vmem:[%s852_s5 + $0x28] sm:$0xff]  ;;  %v167_v29 = vlaneseq }
   0xa   :  { %592 = vmatmul.mubr.msk.bf16.vlgmr.msra.gmra.mrb[0].mxu0 %vm51_vm2, %v543_v13  ;;  %v647_v23 = vpack.c.bf16 %v203_v22, %v202_v21  ;;  %v204_v24 = vld [vmem:[%s852_s5 + $0x30] sm:$0xff]  ;;  %v205_v25 = vld [vmem:[%s852_s5 + $0x38] sm:$0xff]  ;;  %v705_v27 = vmov 1966171168   ;;  %s706_s26 = smov 64   ;;  %vm206_vm3 = vcmask 523264  }
   0xb   :  { %v106_v19 = vsel %vm105_vm1, %v104_v18, %v102_v15  ;;  %642 = vmatpush3.bf16.msra.mxu0 %v639_v14  ;;  %v651_v26 = vpack.c.bf16 %v205_v25, %v204_v24  ;;  %v165_v28 = vunpack.c.l.s4 %v705_v27  ;;  %v168_v31 = vshrl.u32 %v167_v29, 7  ;;  %v327_v50 = vld [vmem:[%s853_s6] sm:$0xf]  ;;  %v668_v29 = vld [vmem:[%s850_s3 + $0x8] sm:$0xff]   ;;  %s707_s2 = smov [#allocation2]  }
   0xc   :  { %v107_v20 = vpack.c.b16 %v106_v19, %v106_v19  ;;  %644 = vmatprep.subr.bf16.mxu0 %v643_v17  ;;  %vm334_vm4 = vcmask 1043456   ;;  %vm288_vm5 = vcmask 31744   ;;  %s535_s13 = sshll.u32 %s707_s2, 4  ;;  %vm527_vm6 = vcmask 254976   ;;  %s536_s13 = int_to_ptr.vmem [resolvable:$true] %s535_s13 }
   0xd   :  { %v166_v30 = vunpack.c.0.s8 %v165_v28  ;;  %v188_v40 = vsub.s32 0, %v168_v31  ;;  %v667_v28 = vld [vmem:[%s850_s3] sm:$0xff]   ;;  %s679_s1 = scalar_lea.vmem %s536_s13, 32  ;;  %p684_p1 = scmp.lt.s32.totalorder %s536_s13, %s536_s13 }
   0xe   :  { %600 = vmatmul.mubr.msk.bf16.vlgmr.msra.gmra.mrb[0].mxu1 %vm51_vm2, %v107_v20  ;;  %p680_p0 = scmp.ne.s32.totalorder %s536_s13, %s679_s1  ;;  %p685_p2 = scmp.lt.s32.totalorder %s679_s1, %s679_s1 }
   0xf   :  { %646 = vmatpush3.bf16.msra.mxu0 %v643_v17  ;;  %635 = vmatprep.mubr.msk.bf16.mxu1 %vm704_vm0, %v703_v1  ;;  %v169_v33 = vsub.s32 %v166_v30, %v168_v31  ;;  %v669_v30 = vld [vmem:[%s850_s3 + $0x10] sm:$0xff]   ;;  %v670_v31 = vld [vmem:[%s850_s3 + $0x18] sm:$0xff]  }
  0x10   :  { %648 = vmatprep.subr.bf16.mxu0 %v647_v23  ;;  %628 = vmatpush3.bf16.msra.mxu1 %v667_v28  ;;  %p686_p3 = por %p685_p2, %p684_p1 }
  0x11   :  { %629 = vmatprep.subr.bf16.mxu1 %v703_v1 }
  0x12   :  { %p687_p4 = pnand %p686_p3, %p680_p0 }
  0x13   :  { %650 = vmatpush3.bf16.msra.mxu0 %v647_v23 }
  0x14   :  { %652 = vmatprep.subr.bf16.mxu0 %v651_v26  ;;  %630 = vmatpush3.bf16.msra.mxu1 %v668_v29 }
  0x15   :  { %631 = vmatprep.subr.bf16.mxu1 %v703_v1 }
  0x17   :  { %654 = vmatpush3.bf16.msra.mxu0 %v651_v26 }
  0x18   :  { %622 = vmatprep.subr.msk.mxu0 %vm334_vm4, %v327_v50  ;;  %632 = vmatpush3.bf16.msra.mxu1 %v669_v30 }
  0x19   :  { %633 = vmatprep.subr.bf16.mxu1 %v703_v1 }
  0x1c   :  { %634 = vmatpush3.bf16.msra.mxu1 %v670_v31 }
  0xdd   :  { %v89_v32 = vpop.f32.mrb[0].mxu0 }
  0xde   :  { %415 = vrot.lane.b32.xlu0 %v89_v32, %s706_s26  ;;  %v593_v34 = vpop.f32.mrb[1].mxu0 }
  0xdf   :  { %v92_v35 = vpop.f32.mrb[2].mxu0 }
  0xe0   :  { %v594_v36 = vpop.f32.mrb[3].mxu0 }
  0xe1   :  { %v157_v37 = vpop.f32.mrb[0].mxu1 }
  0xe2   :  { %v170_v38 = vrot.slane %v157_v37, %v169_v33  ;;  %v601_v39 = vpop.f32.mrb[1].mxu1  ;;  %417 = vrot.lane.b32.xlu0 %v92_v35, %s706_s26 }
  0xe3   :  { %v160_v41 = vpop.f32.mrb[2].mxu1 }
  0xe4   :  { %v171_v42 = vcombine.high %v170_v38, %v170_v38  ;;  %v178_v43 = vrot.slane %v170_v38, %v169_v33  ;;  %v602_v44 = vpop.f32.mrb[3].mxu1 }
  0xe6   :  { %v185_v45 = vrot.slane %v171_v42, %v169_v33  ;;  %v189_v46 = vrot.slane %v178_v43, %v188_v40 }
  0xe8   :  { %v196_v47 = vmul.f32 %v189_v46, %v89_v32  ;;  %v193_v48 = vrot.slane %v185_v45, %v188_v40 }
  0xea   :  { %v197_v49 = vmul.f32 %v193_v48, %v92_v35  ;;  %619 = vmatprep.mubr.msk.f32.mxu0 %vm206_vm3, %v196_v47 }
  0xec   :  { %620 = vmatmul.mubr.msk.f32.vlgmr.msra.gmra.mrb[4].mxu0 %vm206_vm3, %v197_v49 }
  0xed   :  { %623 = vmatpush3.msk.msra.mxu0 %vm334_vm4, %v327_v50 }
 0x150   :  { %v416_v32 = vpop.permute.xlu0 %415 }
 0x154   :  { %v418_v33 = vpop.permute.xlu0 %417 }
 0x1bf   :  { %v621_v51 = vpop.f32.mrb[4].mxu0 }
 0x1c0   :  { %v296_v52 = vsel %vm288_vm5, %v621_v51, -inf  ;;  %v279_v53 = vpop.f32.mrb[5].mxu0 }
 0x1c1   :  { %v297_v54 = vrot.slane %v296_v52, 4  ;;  %v289_v55 = vsel %vm288_vm5, %v279_v53, -inf }
 0x1c2   :  { %v290_v56 = vrot.slane %v289_v55, 4 }
 0x1c3   :  { %v298_v57 = vmax.f32 %v296_v52, %v297_v54 }
 0x1c4   :  { %v291_v58 = vmax.f32 %v289_v55, %v290_v56 }
 0x1c5   :  { %v299_v59 = vrot.slane %v298_v57, 2 }
 0x1c6   :  { %v292_v60 = vrot.slane %v291_v58, 2 }
 0x1c7   :  { %v300_v61 = vmax.f32 %v298_v57, %v299_v59  ;;  %v557_v57 = vld [vmem:[%s851_s4] ss:$0 sm:$0xff] }
 0x1c8   :  { %v293_v62 = vmax.f32 %v291_v58, %v292_v60 }
 0x1c9   :  { %v301_v63 = vrot.slane %v300_v61, 1 }
 0x1ca   :  { %v294_v0 = vrot.slane %v293_v62, 1 }
 0x1cb   :  { %v302_v2 = vmax.f32 %v300_v61, %v301_v63 }
 0x1cc   :  { %v295_v3 = vmax.f32 %v293_v62, %v294_v0 }
 0x1cd   :  { %v304_v4 = vsub.f32 %v621_v51, %v302_v2 }
 0x1ce   :  { %v303_v5 = vsub.f32 %v279_v53, %v295_v3 }
 0x1cf   :  { %v307_v6 = vmul.f32 1.442695, %v304_v4 }
 0x1d0   :  { %v305_v7 = vmul.f32 1.442695, %v303_v5 }
 0x1d1   :  { %671 = vpow2.f32 %v307_v6 }
 0x1d2   :  { %673 = vpow2.f32 %v305_v7 }
 0x1db   :  { %v672_v8 = vpop.eup %671 }
 0x1dc   :  { %v674_v9 = vpop.eup %673  ;;  %v316_v10 = vsel %vm288_vm5, %v672_v8, 0.0 }
 0x1dd   :  { %v317_v11 = vrot.slane %v316_v10, 4  ;;  %v309_v12 = vsel %vm288_vm5, %v674_v9, 0.0 }
 0x1de   :  { %v310_v13 = vrot.slane %v309_v12, 4 }
 0x1df   :  { %v318_v14 = vadd.f32 %v317_v11, %v316_v10 }
 0x1e0   :  { %v311_v15 = vadd.f32 %v310_v13, %v309_v12 }
 0x1e1   :  { %v319_v16 = vrot.slane %v318_v14, 2 }
 0x1e2   :  { %v312_v17 = vrot.slane %v311_v15, 2 }
 0x1e3   :  { %v320_v18 = vadd.f32 %v319_v16, %v318_v14 }
 0x1e4   :  { %v313_v19 = vadd.f32 %v312_v17, %v311_v15 }
 0x1e5   :  { %v321_v20 = vrot.slane %v320_v18, 1 }
 0x1e6   :  { %v314_v21 = vrot.slane %v313_v19, 1 }
 0x1e7   :  { %v322_v22 = vadd.f32 %v321_v20, %v320_v18 }
 0x1e8   :  { %v315_v23 = vadd.f32 %v314_v21, %v313_v19 }
 0x1e9   :  { %675 = vrcp.f32 %v322_v22 }
 0x1ea   :  { %677 = vrcp.f32 %v315_v23 }
 0x1f3   :  { %v676_v24 = vpop.eup %675 }
 0x1f4   :  { %v678_v25 = vpop.eup %677  ;;  %v326_v27 = vmul.f32 %v676_v24, %v672_v8 }
 0x1f5   :  { %v325_v26 = vmul.f32 %v678_v25, %v674_v9 }
 0x1f7   :  { %624 = vmatprep.mubr.msk.f32.mxu0 %vm288_vm5, %v325_v26 }
 0x1f8   :  { %625 = vmatmul.mubr.msk.f32.vlgmr.msra.gmra.mrb[6].mxu0 %vm288_vm5, %v326_v27 }
 0x2cb   :  { %v626_v34 = vpop.f32.mrb[6].mxu0 }
 0x2cc   :  { %v422_v35 = vmul.f32 %v626_v34, %v418_v33  ;;  %v404_v36 = vpop.f32.mrb[7].mxu0 }
 0x2cd   :  { %v421_v37 = vmul.f32 %v416_v32, %v404_v36 }
 0x2ce   :  { %v430_v38 = vsel %vm206_vm3, %v422_v35, 0.0 }
 0x2cf   :  { %v431_v39 = vrot.slane %v430_v38, 4  ;;  %v423_v40 = vsel %vm206_vm3, %v421_v37, 0.0 }
 0x2d0   :  { %v424_v41 = vrot.slane %v423_v40, 4 }
 0x2d1   :  { %v432_v42 = vadd.f32 %v431_v39, %v430_v38 }
 0x2d2   :  { %v425_v43 = vadd.f32 %v424_v41, %v423_v40 }
 0x2d3   :  { %v433_v1 = vrot.slane %v432_v42, 2 }
 0x2d4   :  { %v426_v44 = vrot.slane %v425_v43, 2 }
 0x2d5   :  { %v434_v45 = vadd.f32 %v433_v1, %v432_v42 }
 0x2d6   :  { %v427_v46 = vadd.f32 %v426_v44, %v425_v43 }
 0x2d7   :  { %v435_v47 = vrot.slane %v434_v45, 1 }
 0x2d8   :  { %v428_v48 = vrot.slane %v427_v46, 1 }
 0x2d9   :  { %v436_v49 = vadd.f32 %v435_v47, %v434_v45 }
 0x2da   :  { %v429_v50 = vadd.f32 %v428_v48, %v427_v46 }
 0x2db   :  { %v438_v51 = vpack.c.bf16 %v436_v49, %v436_v49 }
 0x2dc   :  { %v437_v52 = vpack.c.bf16 %v429_v50, %v429_v50 }
 0x2dd   :  { %v457_v53 = vunpack.c.l.b16 %v438_v51 }
 0x2de   :  { %v456_v54 = vunpack.c.l.b16 %v437_v52 }
 0x2e0   :  { %v458_v55 = vsel %vm105_vm1, %v457_v53, %v456_v54 }
 0x2e1   :  { %v459_v56 = vpack.c.b16 %v458_v55, %v458_v55 }
 0x2e3   :  { %636 = vmatmul.mubr.msk.bf16.vlgmr.msra.gmra.mrb[4].mxu1 %vm206_vm3, %v459_v56 }
 0x3b6   :  { %v521_v58 = vpop.f32.mrb[4].mxu1 }
 0x3b7   :  { %v522_v59 = vadd.f32 %v557_v57, %v521_v58  ;;  %v637_v60 = vpop.f32.mrb[5].mxu1 }
 0x3b8   :  { %v524_v61 = vpop.f32.mrb[6].mxu1 }
 0x3b9   :  { %v638_v62 = vpop.f32.mrb[7].mxu1  ;;  %528 = vst.msk [vmem:[#allocation2] sm:$0x3] %vm527_vm6, %v522_v59 }
 0x3ba   :  { %690 = shalt.err (!%p687_p4)
}
 0x3bb   :  { %s691_s4 = scalar_lea.hbm %s854_s7, 32 }
 0x3bc   :  { %p692_p5 = scmp.ne.s32.totalorder %s854_s7, %s691_s4  ;;  %p695_p6 = scmp.lt.u32.totalorder %s691_s4, %s854_s7 }
 0x3be   :  { %p697_p7 = pnand %p695_p6, %p692_p5 }
 0x3c0   :  { %700 = shalt.err (!%p697_p7)
}
 0x3c1   :  { %538 = dma.vmem_to_hbm [thread:$0]  %s536_s13, 32, %s854_s7, [#allocation3]  }
 0x3c2   :  { %701 = dma.done.wait [#allocation3], 32  }
 0x3c3   :  { %702 = vsyncadd [#allocation3], 4294967264 }
 0x3c4   :  { %542 = vsyncpa [#allocation3], 1 }

</bundles_post_ra>
